<compile_context>
chip_gen: v7x
topology: tpu7x:2x2x1
jax: 0.10.0
libtpu: 0.0.40
codegen_flags: <defaults>
</compile_context>

<pallas_src>
import functools

import jax
import jax.numpy as jnp
from jax import lax
from jax.experimental import pallas as pl
from jax.experimental.pallas import tpu as pltpu


def _cdiv(a, b):
    return -(-a // b)


def _round_up(x, m):
    return ((x + m - 1) // m) * m


def _round_down(x, m):
    return (x // m) * m


def _vmem_capacity_bytes():
    try:
        info = pltpu.get_tpu_info()
        cap = int(getattr(info, "vmem_capacity_bytes", 0))
        if cap > 0:
            return cap
    except Exception:
        pass
    return 64 << 20  # conservative fallback: v7x per-TensorCore VMEM


# ---------------------------------------------------------------------------
# Fused kernel: grid = (phase, tile)
#   phase 0 -> per-row sum of squares; phase 1 -> L1 sum of normalized rows
# ---------------------------------------------------------------------------
def _kta_kernel(s_ref, t_ref, out_ref, ss_ref, st_ref, l1_ref, *,
                feat_dim, tile_d, scale, ragged):
    phase = pl.program_id(0)
    tile = pl.program_id(1)
    n_tiles = pl.num_programs(1)

    def _masked(x):
        # Zero out the out-of-bounds tail of the last (partial) tile.  Only
        # emitted when the tiling is ragged; zeros are inert for both the
        # norm and the L1 sum.
        if not ragged:
            return x
        col = lax.broadcasted_iota(jnp.int32, x.shape, 1) + tile * tile_d
        return jnp.where(col < feat_dim, x, 0.0)

    @pl.when(jnp.logical_and(phase == 0, tile == 0))
    def _():
        ss_ref[...] = jnp.zeros_like(ss_ref)
        st_ref[...] = jnp.zeros_like(st_ref)

    @pl.when(phase == 0)
    def _():
        s = _masked(s_ref[...].astype(jnp.float32))      # (B, tile_d)
        t = _masked(t_ref[...].astype(jnp.float32))
        ss_ref[...] += jnp.sum(s * s, axis=1, keepdims=True)   # (B, 1)
        st_ref[...] += jnp.sum(t * t, axis=1, keepdims=True)

    @pl.when(jnp.logical_and(phase == 1, tile == 0))
    def _():
        # Reuse the sum-of-squares buffers to hold the inverse norms; rsqrt
        # runs on the EUP and we multiply later instead of dividing per elem.
        ss_ref[...] = lax.rsqrt(ss_ref[...])
        st_ref[...] = lax.rsqrt(st_ref[...])
        l1_ref[...] = jnp.zeros_like(l1_ref)

    @pl.when(phase == 1)
    def _():
        s = _masked(s_ref[...].astype(jnp.float32))
        t = _masked(t_ref[...].astype(jnp.float32))
        diff = s * ss_ref[...] - t * st_ref[...]
        l1_ref[...] += jnp.sum(jnp.abs(diff), axis=1, keepdims=True)

    @pl.when(jnp.logical_and(phase == 1, tile == n_tiles - 1))
    def _():
        # reduction='mean' -> scale by 1/(B*D) computed exactly in Python
        out_ref[...] = (jnp.sum(l1_ref[...]) * scale).reshape(1, 1)


def kta_loss(student_feat, teacher_feat, *, target_block_bytes=None,
             force_multi_tile=False):
    """KTALoss with p=1, q=2, reduction='mean'.

    student_feat, teacher_feat: arrays of identical shape, e.g. NCHW
    (B, C, H, W); anything flattenable.  Returns a scalar float32 loss.
    """
    assert student_feat.shape == teacher_feat.shape
    B = student_feat.shape[0]
    s = student_feat.reshape(B, -1)   # flatten(1); contiguous -> no HBM copy
    t = teacher_feat.reshape(B, -1)
    D = s.shape[1]

    itemsize = max(jnp.dtype(s.dtype).itemsize, jnp.dtype(t.dtype).itemsize)

    # ---- VMEM budget (chip-aware, with headroom) -----------------------------
    vmem_cap = _vmem_capacity_bytes()
    budget = max(min(vmem_cap * 3 // 4, 96 << 20), 32 << 20)

    B_pad = _round_up(B, 8)            # sublane padding of a VMEM block
    D_lane = _round_up(D, 128)         # lane padding of a VMEM block
    scratch_bytes = 3 * B_pad * 128 * 4
    budget_blocks = budget - scratch_bytes - (2 << 20)

    # VMEM footprint of one full (B, D) input block (2 inputs x 2 pipeline bufs)
    full_block_vmem = B_pad * D_lane * itemsize
    single_pass = (4 * full_block_vmem <= budget_blocks) and not force_multi_tile

    if single_pass:
        # Whole pair stays VMEM-resident: the index_map is phase-independent,
        # so phase 1 reuses the block fetched for phase 0 -> one HBM read.
        tile_d, n_tiles = D, 1
    else:
        if target_block_bytes is None:
            # bigger tiles where VMEM allows (v5e/v6e: 128 MiB), 4 MiB on v7x
            tgt = (8 << 20) if vmem_cap >= (100 << 20) else (4 << 20)
        else:
            tgt = int(target_block_bytes)
        tile_d = max(tgt // (B * itemsize), 128)
        tile_cap = max(128, _round_down(budget_blocks // (4 * B_pad * itemsize), 128))
        tile_d = min(tile_d, tile_cap, D_lane)
        tile_d = max(128, _round_down(tile_d, 128))
        if tile_d >= D:
            tile_d, n_tiles = D, 1
        else:
            n_tiles = _cdiv(D, tile_d)

    ragged = (n_tiles * tile_d != D)        # last tile has an OOB tail -> mask
    scale = 1.0 / float(B * D)
    passes = 1 if n_tiles == 1 else 2

    kernel = functools.partial(_kta_kernel, feat_dim=D, tile_d=tile_d,
                               scale=scale, ragged=ragged)

    out = pl.pallas_call(
        kernel,
        out_shape=jax.ShapeDtypeStruct((1, 1), jnp.float32),
        grid_spec=pltpu.PrefetchScalarGridSpec(
            num_scalar_prefetch=0,
            grid=(2, n_tiles),                              # (phase, tile)
            in_specs=[
                pl.BlockSpec((B, tile_d), lambda p, k: (0, k)),
                pl.BlockSpec((B, tile_d), lambda p, k: (0, k)),
            ],
            out_specs=pl.BlockSpec((1, 1), lambda p, k: (0, 0)),
            scratch_shapes=[
                pltpu.VMEM((B, 1), jnp.float32),   # sum(s*s) -> 1/||s||
                pltpu.VMEM((B, 1), jnp.float32),   # sum(t*t) -> 1/||t||
                pltpu.VMEM((B, 1), jnp.float32),   # running |diff| sum
            ],
        ),
        compiler_params=pltpu.CompilerParams(
            dimension_semantics=("arbitrary", "arbitrary"),
            vmem_limit_bytes=int(budget),
        ),
        cost_estimate=pl.CostEstimate(
            flops=8 * B * D,
            transcendentals=2 * B,
            bytes_accessed=passes * 2 * B * D * itemsize + 4,
        ),
    )(s, t)

    return out[0, 0]


def _kta_loss_ref(student_feat, teacher_feat):
    """Pure-JAX reference mirroring the PyTorch forward (p=1, q=2, mean)."""
    B = student_feat.shape[0]
    s = student_feat.reshape(B, -1).astype(jnp.float32)
    t = teacher_feat.reshape(B, -1).astype(jnp.float32)
    s_n = s / jnp.linalg.norm(s, ord=2, axis=1, keepdims=True)
    t_n = t / jnp.linalg.norm(t, ord=2, axis=1, keepdims=True)
    return jnp.mean(jnp.abs(s_n - t_n))


if __name__ == "__main__":
    key = jax.random.PRNGKey(0)
    k1, k2, k3, k4, k5, k6 = jax.random.split(key, 6)

    # 1) NCHW as the PyTorch hooks would deliver: batch=2, channels=4, 16x16
    #    D = 1024 (multiple of 128) -> single-pass, no masking.
    B, C, H, W = 2, 4, 16, 16
    student_out = jax.random.normal(k1, (B, C, H, W), dtype=jnp.float32)
    teacher_out = jax.random.normal(k2, (B, C, H, W), dtype=jnp.float32)
    loss = jax.block_until_ready(kta_loss(student_out, teacher_out))
    ref = jax.block_until_ready(_kta_loss_ref(student_out, teacher_out))
    assert jnp.allclose(loss, ref, rtol=1e-5, atol=1e-6), (loss, ref)

    # 2) ragged feature size (D = 3*7*7 = 147): single-pass full-extent block.
    s2 = jax.random.normal(k3, (2, 3, 7, 7), dtype=jnp.float32)
    t2 = jax.random.normal(k4, (2, 3, 7, 7), dtype=jnp.float32)
    loss2 = jax.block_until_ready(kta_loss(s2, t2))
    ref2 = jax.block_until_ready(_kta_loss_ref(s2, t2))
    assert jnp.allclose(loss2, ref2, rtol=1e-5, atol=1e-6), (loss2, ref2)

    # 3) force the multi-tile + ragged-tail masking path (D = 400, tile_d = 128)
    s3 = jax.random.normal(k5, (2, 4, 10, 10), dtype=jnp.float32)
    t3 = jax.random.normal(k6, (2, 4, 10, 10), dtype=jnp.float32)
    loss3 = jax.block_until_ready(
        kta_loss(s3, t3, target_block_bytes=1024, force_multi_tile=True))
    ref3 = jax.block_until_ready(_kta_loss_ref(s3, t3))
    assert jnp.allclose(loss3, ref3, rtol=1e-5, atol=1e-6), (loss3, ref3)

    print("KERNEL_OK")
</pallas_src>

<mosaic_0001>
module attributes {stable_mosaic.version = 11 : i64} {
  func.func @_kta_kernel(%arg0: i32, %arg1: i32, %arg2: memref<2x1024xf32, #tpu.memory_space<vmem>>, %arg3: memref<2x1024xf32, #tpu.memory_space<vmem>>, %arg4: memref<1x1xf32, #tpu.memory_space<vmem>>, %arg5: memref<2x1xf32, #tpu.memory_space<vmem>>, %arg6: memref<2x1xf32, #tpu.memory_space<vmem>>, %arg7: memref<2x1xf32, #tpu.memory_space<vmem>>) attributes {dimension_semantics = [#tpu.dimension_semantics<arbitrary>, #tpu.dimension_semantics<arbitrary>], iteration_bounds = array<i64: 2, 1>, scalar_prefetch = 0 : i64, scratch_operands = 3 : i64, tpu.core_type = #tpu.core_type<tc>, window_params = [{transform_indices = @transform_0, window_bounds = array<i64: 2, 1024>}, {transform_indices = @transform_1, window_bounds = array<i64: 2, 1024>}, {pipeline_mode = #tpu.pipeline_mode<synchronous>, transform_indices = @transform_2, window_bounds = array<i64: 1, 1>}]} {
    %c0_i32 = arith.constant 0 : i32
    %0 = arith.cmpi eq, %arg0, %c0_i32 : i32
    %c0_i32_0 = arith.constant 0 : i32
    %1 = arith.cmpi eq, %arg1, %c0_i32_0 : i32
    %2 = arith.andi %0, %1 : i1
    %3 = arith.extui %2 : i1 to i32
    %c0_i32_1 = arith.constant 0 : i32
    %4 = arith.cmpi ne, %3, %c0_i32_1 : i32
    scf.if %4 {
      %cst = arith.constant 0.000000e+00 : f32
      %21 = vector.broadcast %cst : f32 to vector<2x1xf32>
      %c0 = arith.constant 0 : index
      %c0_11 = arith.constant 0 : index
      %22 = vector.load %arg5[%c0, %c0_11] : memref<2x1xf32, #tpu.memory_space<vmem>>, vector<2x1xf32>
      tpu.vector_store %arg5[%c0, %c0_11], %21 {strides = array<i32>} : memref<2x1xf32, #tpu.memory_space<vmem>>, vector<2x1xf32>,
      %cst_12 = arith.constant 0.000000e+00 : f32
      %23 = vector.broadcast %cst_12 : f32 to vector<2x1xf32>
      %c0_13 = arith.constant 0 : index
      %c0_14 = arith.constant 0 : index
      %24 = vector.load %arg6[%c0_13, %c0_14] : memref<2x1xf32, #tpu.memory_space<vmem>>, vector<2x1xf32>
      tpu.vector_store %arg6[%c0_13, %c0_14], %23 {strides = array<i32>} : memref<2x1xf32, #tpu.memory_space<vmem>>, vector<2x1xf32>,
    } else {
    }
    %c0_i32_2 = arith.constant 0 : i32
    %5 = arith.cmpi eq, %arg0, %c0_i32_2 : i32
    %6 = arith.extui %5 : i1 to i32
    %c0_i32_3 = arith.constant 0 : i32
    %7 = arith.cmpi ne, %6, %c0_i32_3 : i32
    scf.if %7 {
      %c0 = arith.constant 0 : index
      %c0_11 = arith.constant 0 : index
      %21 = vector.load %arg2[%c0, %c0_11] : memref<2x1024xf32, #tpu.memory_space<vmem>>, vector<2x1024xf32>
      %c0_12 = arith.constant 0 : index
      %c0_13 = arith.constant 0 : index
      %22 = vector.load %arg3[%c0_12, %c0_13] : memref<2x1024xf32, #tpu.memory_space<vmem>>, vector<2x1024xf32>
      %c0_14 = arith.constant 0 : index
      %c0_15 = arith.constant 0 : index
      %23 = vector.load %arg5[%c0_14, %c0_15] : memref<2x1xf32, #tpu.memory_space<vmem>>, vector<2x1xf32>
      %24 = arith.mulf %21, %21 : vector<2x1024xf32>
      %cst = arith.constant dense<0.000000e+00> : vector<2xf32>
      %25 = vector.multi_reduction <add>, %24, %cst [1] : vector<2x1024xf32> to vector<2xf32>
      %26 = vector.shape_cast %25 : vector<2xf32> to vector<2x1xf32>
      %27 = arith.addf %23, %26 : vector<2x1xf32>
      %c0_16 = arith.constant 0 : index
      %c0_17 = arith.constant 0 : index
      %28 = vector.load %arg5[%c0_16, %c0_17] : memref<2x1xf32, #tpu.memory_space<vmem>>, vector<2x1xf32>
      tpu.vector_store %arg5[%c0_16, %c0_17], %27 {strides = array<i32>} : memref<2x1xf32, #tpu.memory_space<vmem>>, vector<2x1xf32>,
      %c0_18 = arith.constant 0 : index
      %c0_19 = arith.constant 0 : index
      %29 = vector.load %arg6[%c0_18, %c0_19] : memref<2x1xf32, #tpu.memory_space<vmem>>, vector<2x1xf32>
      %30 = arith.mulf %22, %22 : vector<2x1024xf32>
      %cst_20 = arith.constant dense<0.000000e+00> : vector<2xf32>
      %31 = vector.multi_reduction <add>, %30, %cst_20 [1] : vector<2x1024xf32> to vector<2xf32>
      %32 = vector.shape_cast %31 : vector<2xf32> to vector<2x1xf32>
      %33 = arith.addf %29, %32 : vector<2x1xf32>
      %c0_21 = arith.constant 0 : index
      %c0_22 = arith.constant 0 : index
      %34 = vector.load %arg6[%c0_21, %c0_22] : memref<2x1xf32, #tpu.memory_space<vmem>>, vector<2x1xf32>
      tpu.vector_store %arg6[%c0_21, %c0_22], %33 {strides = array<i32>} : memref<2x1xf32, #tpu.memory_space<vmem>>, vector<2x1xf32>,
    } else {
    }
    %c1_i32 = arith.constant 1 : i32
    %8 = arith.cmpi eq, %arg0, %c1_i32 : i32
    %c0_i32_4 = arith.constant 0 : i32
    %9 = arith.cmpi eq, %arg1, %c0_i32_4 : i32
    %10 = arith.andi %8, %9 : i1
    %11 = arith.extui %10 : i1 to i32
    %c0_i32_5 = arith.constant 0 : i32
    %12 = arith.cmpi ne, %11, %c0_i32_5 : i32
    scf.if %12 {
      %c0 = arith.constant 0 : index
      %c0_11 = arith.constant 0 : index
      %21 = vector.load %arg5[%c0, %c0_11] : memref<2x1xf32, #tpu.memory_space<vmem>>, vector<2x1xf32>
      %22 = math.rsqrt %21 : vector<2x1xf32>
      %c0_12 = arith.constant 0 : index
      %c0_13 = arith.constant 0 : index
      %23 = vector.load %arg5[%c0_12, %c0_13] : memref<2x1xf32, #tpu.memory_space<vmem>>, vector<2x1xf32>
      tpu.vector_store %arg5[%c0_12, %c0_13], %22 {strides = array<i32>} : memref<2x1xf32, #tpu.memory_space<vmem>>, vector<2x1xf32>,
      %c0_14 = arith.constant 0 : index
      %c0_15 = arith.constant 0 : index
      %24 = vector.load %arg6[%c0_14, %c0_15] : memref<2x1xf32, #tpu.memory_space<vmem>>, vector<2x1xf32>
      %25 = math.rsqrt %24 : vector<2x1xf32>
      %c0_16 = arith.constant 0 : index
      %c0_17 = arith.constant 0 : index
      %26 = vector.load %arg6[%c0_16, %c0_17] : memref<2x1xf32, #tpu.memory_space<vmem>>, vector<2x1xf32>
      tpu.vector_store %arg6[%c0_16, %c0_17], %25 {strides = array<i32>} : memref<2x1xf32, #tpu.memory_space<vmem>>, vector<2x1xf32>,
      %cst = arith.constant 0.000000e+00 : f32
      %27 = vector.broadcast %cst : f32 to vector<2x1xf32>
      %c0_18 = arith.constant 0 : index
      %c0_19 = arith.constant 0 : index
      %28 = vector.load %arg7[%c0_18, %c0_19] : memref<2x1xf32, #tpu.memory_space<vmem>>, vector<2x1xf32>
      tpu.vector_store %arg7[%c0_18, %c0_19], %27 {strides = array<i32>} : memref<2x1xf32, #tpu.memory_space<vmem>>, vector<2x1xf32>,
    } else {
    }
    %c1_i32_6 = arith.constant 1 : i32
    %13 = arith.cmpi eq, %arg0, %c1_i32_6 : i32
    %14 = arith.extui %13 : i1 to i32
    %c0_i32_7 = arith.constant 0 : i32
    %15 = arith.cmpi ne, %14, %c0_i32_7 : i32
    scf.if %15 {
      %c0 = arith.constant 0 : index
      %c0_11 = arith.constant 0 : index
      %21 = vector.load %arg2[%c0, %c0_11] : memref<2x1024xf32, #tpu.memory_space<vmem>>, vector<2x1024xf32>
      %c0_12 = arith.constant 0 : index
      %c0_13 = arith.constant 0 : index
      %22 = vector.load %arg3[%c0_12, %c0_13] : memref<2x1024xf32, #tpu.memory_space<vmem>>, vector<2x1024xf32>
      %c0_14 = arith.constant 0 : index
      %c0_15 = arith.constant 0 : index
      %23 = vector.load %arg5[%c0_14, %c0_15] : memref<2x1xf32, #tpu.memory_space<vmem>>, vector<2x1xf32>
      %24 = vector.broadcast %23 : vector<2x1xf32> to vector<2x1024xf32>
      %25 = arith.mulf %21, %24 : vector<2x1024xf32>
      %c0_16 = arith.constant 0 : index
      %c0_17 = arith.constant 0 : index
      %26 = vector.load %arg6[%c0_16, %c0_17] : memref<2x1xf32, #tpu.memory_space<vmem>>, vector<2x1xf32>
      %27 = vector.broadcast %26 : vector<2x1xf32> to vector<2x1024xf32>
      %28 = arith.mulf %22, %27 : vector<2x1024xf32>
      %29 = arith.subf %25, %28 : vector<2x1024xf32>
      %c0_18 = arith.constant 0 : index
      %c0_19 = arith.constant 0 : index
      %30 = vector.load %arg7[%c0_18, %c0_19] : memref<2x1xf32, #tpu.memory_space<vmem>>, vector<2x1xf32>
      %31 = math.absf %29 : vector<2x1024xf32>
      %cst = arith.constant dense<0.000000e+00> : vector<2xf32>
      %32 = vector.multi_reduction <add>, %31, %cst [1] : vector<2x1024xf32> to vector<2xf32>
      %33 = vector.shape_cast %32 : vector<2xf32> to vector<2x1xf32>
      %34 = arith.addf %30, %33 : vector<2x1xf32>
      %c0_20 = arith.constant 0 : index
      %c0_21 = arith.constant 0 : index
      %35 = vector.load %arg7[%c0_20, %c0_21] : memref<2x1xf32, #tpu.memory_space<vmem>>, vector<2x1xf32>
      tpu.vector_store %arg7[%c0_20, %c0_21], %34 {strides = array<i32>} : memref<2x1xf32, #tpu.memory_space<vmem>>, vector<2x1xf32>,
    } else {
    }
    %c1_i32_8 = arith.constant 1 : i32
    %16 = arith.cmpi eq, %arg0, %c1_i32_8 : i32
    %c0_i32_9 = arith.constant 0 : i32
    %17 = arith.cmpi eq, %arg1, %c0_i32_9 : i32
    %18 = arith.andi %16, %17 : i1
    %19 = arith.extui %18 : i1 to i32
    %c0_i32_10 = arith.constant 0 : i32
    %20 = arith.cmpi ne, %19, %c0_i32_10 : i32
    scf.if %20 {
      %c0 = arith.constant 0 : index
      %c0_11 = arith.constant 0 : index
      %21 = vector.load %arg7[%c0, %c0_11] : memref<2x1xf32, #tpu.memory_space<vmem>>, vector<2x1xf32>
      %22 = vector.shape_cast %21 : vector<2x1xf32> to vector<1x2x1xf32>
      %cst = arith.constant dense<0.000000e+00> : vector<1xf32>
      %23 = vector.multi_reduction <add>, %22, %cst [1, 2] : vector<1x2x1xf32> to vector<1xf32>
      %24 = vector.shape_cast %23 : vector<1xf32> to vector<1x1x1xf32>
      %25 = vector.extract %24[0, 0, 0] : f32 from vector<1x1x1xf32>
      %cst_12 = arith.constant 4.8828125E-4 : f32
      %26 = arith.mulf %25, %cst_12 : f32
      %27 = vector.broadcast %26 : f32 to vector<1x1xf32>
      %c0_13 = arith.constant 0 : index
      %c0_14 = arith.constant 0 : index
      %28 = vector.load %arg4[%c0_13, %c0_14] : memref<1x1xf32, #tpu.memory_space<vmem>>, vector<1x1xf32>
      tpu.vector_store %arg4[%c0_13, %c0_14], %27 {strides = array<i32>} : memref<1x1xf32, #tpu.memory_space<vmem>>, vector<1x1xf32>,
    } else {
    }
    return
  }
  func.func @transform_0(%arg0: i32, %arg1: i32) -> (i32, i32) {
    %c0_i32 = arith.constant 0 : i32
    %c0_i32_0 = arith.constant 0 : i32
    return %c0_i32, %arg1 : i32, i32
  }
  func.func @transform_1(%arg0: i32, %arg1: i32) -> (i32, i32) {
    %c0_i32 = arith.constant 0 : i32
    %c0_i32_0 = arith.constant 0 : i32
    return %c0_i32, %arg1 : i32, i32
  }
  func.func @transform_2(%arg0: i32, %arg1: i32) -> (i32, i32) {
    %c0_i32 = arith.constant 0 : i32
    %c0_i32_0 = arith.constant 0 : i32
    %c0_i32_1 = arith.constant 0 : i32
    return %c0_i32, %c0_i32_0 : i32, i32
  }
}

</mosaic_0001>

<bundles_post_ra>
// kernel: tpu_custom_call.1
= control target key start
LH: loop header
LB: loop body
LE: loop exit
PB: predicated region body
PF: predicated region fallthrough
CT: control target
= control target key end

     0   :  { %7 = vsyncpa [#allocation6], 0  ;;  %s914_s0 = inlined_call_operand.hbm [shape: f32[2,1024], index: 0, kind: input, shape index: {}]   ;;  %s915_s1 = inlined_call_operand.hbm [shape: f32[2,1024], index: 1, kind: input, shape index: {}]   ;;  %s916_s2 = inlined_call_operand.hbm [shape: f32[1,1], index: 2, kind: output, shape index: {}]  }
   0x1   :  { %8 = vsyncpa [#allocation9], 0 }
   0x2   :  { %9 = vsyncpa [#allocation7], 0  ;;  %s747_s9 = smov 0   ;;  %s749_s10 = smov 0  }
   0x3   :  { %s751_s11 = smov 0  }
   0x4 LB: > { %s523_s12 = sadd.s32 4294967295, %s721_s11   ;;  %s27_s13 = sadd.s32 1, %s717_s10  ;;  %s721_s11 = sphi %s751_s11, %s15_s11   ;;  %s717_s10 = sphi %s749_s10, %s927_s10   ;;  %s713_s9 = sphi %s747_s9, %s926_s9  }
   0x5   : > { %p29_p0 = scmp.ge.s32.totalorder %s27_s13, 2  ;;  %p524_p1 = scmp.ge.s32.totalorder %s721_s11, 1 }
   0x6   : > { %p105_p2 = scmp.lt.s32.totalorder %s721_s11, 3  ;;  %p774_p4 = scmp.eq.s32.totalorder %s523_s12, 0 }
   0x7   : > { %s929_s13 = smov (%p29_p0, %s27_s13), 0  ;;  %s723_s16 = smov [#allocation5]  }
   0x8   : > { %p768_p3 = pnand %p524_p1, %p105_p2  ;;  %s121_s17 = sshll.u32 %s723_s16, 4  ;;  %s122_s17 = int_to_ptr.vmem [resolvable:$true] %s121_s17 }
   0x9   : > { %s921_s15 = scalar_select %p774_p4, 1, 0 }
   0xa   : > { %s920_s14 = scalar_select %p768_p3, 1, 0 }
   0xb   : > { %p554_p5 = pneg %p768_p3  ;;  %s724_s18 = smov [#allocation8]  }
   0xc   : > { %s135_s19 = sshll.u32 %s724_s18, 4  ;;  %s605_s23 = scalar_lea.hbm %s914_s0, 256  ;;  %s786_s19 = int_to_ptr.vmem [resolvable:$true] %s135_s19 }
   0xd   : > { %p782_p6 = pnand %p774_p4, %p554_p5  ;;  %p606_p7 = scmp.ne.s32.totalorder %s914_s0, %s605_s23 }
   0xe   : > { %p612_p11 = scmp.lt.u32.totalorder %s605_s23, %s914_s0 }
   0xf   : > { %p607_p8 = pneg %p782_p6 }
  0x11   : > { %p608_p9 = pnand %p607_p8, %p606_p7 }
  0x13   : > { %p609_p10 = pneg %p608_p9 }
  0x15   : > { %p614_p12 = pnand %p612_p11, %p609_p10 }
  0x17   : > { %617 = shalt.err (!%p614_p12)
}
  0x18   : > { %s618_s28 = scalar_lea.vmem %s122_s17, 256  ;;  %p626_p2 = scmp.lt.s32.totalorder %s122_s17, %s122_s17 }
  0x19   : > { %p619_p13 = scmp.ne.s32.totalorder %s122_s17, %s618_s28  ;;  %p627_p5 = scmp.lt.s32.totalorder %s618_s28, %s618_s28 }
  0x1b   : > { %p621_p0 = pnand %p619_p13, %p607_p8  ;;  %p628_p4 = por %p627_p5, %p626_p2 }
  0x1d   : > { %p622_p1 = pneg %p621_p0 }
  0x1f   : > { %p629_p3 = pnand %p628_p4, %p622_p1 }
  0x21   : > { %632 = shalt.err (!%p629_p3)
}
  0x22   : > { %557 = dma.hbm_to_vmem [thread:$0]  (!%p782_p6), %s914_s0, 256, %s122_s17, [#allocation6]  }
  0x23   : > { %s633_s5 = scalar_lea.hbm %s915_s1, 256 }
  0x24   : > { %p634_p7 = scmp.ne.s32.totalorder %s915_s1, %s633_s5  ;;  %p640_p3 = scmp.lt.u32.totalorder %s633_s5, %s915_s1 }
  0x26   : > { %p636_p9 = pnand %p634_p7, %p607_p8 }
  0x28   : > { %p637_p4 = pneg %p636_p9 }
  0x2a   : > { %p642_p10 = pnand %p640_p3, %p637_p4 }
  0x2c   : > { %645 = shalt.err (!%p642_p10)
}
  0x2d   : > { %s646_s17 = scalar_lea.vmem %s786_s19, 256  ;;  %p654_p0 = scmp.lt.s32.totalorder %s786_s19, %s786_s19 }
  0x2e   : > { %p647_p11 = scmp.ne.s32.totalorder %s786_s19, %s646_s17  ;;  %p655_p1 = scmp.lt.s32.totalorder %s646_s17, %s646_s17 }
  0x30   : > { %p649_p12 = pnand %p647_p11, %p607_p8  ;;  %p656_p2 = por %p655_p1, %p654_p0 }
  0x32   : > { %p650_p13 = pneg %p649_p12 }
  0x34   : > { %p657_p5 = pnand %p656_p2, %p650_p13 }
  0x36   : > { %660 = shalt.err (!%p657_p5)
}
  0x37   : > { %560 = dma.hbm_to_vmem [thread:$0]  (!%p782_p6), %s915_s1, 256, %s786_s19, [#allocation9]  }
  0x38   : > { %p923_p7 = scmp.ne.s32.totalorder %s920_s14, 0 }
  0x39   : > { %p924_p9 = scmp.ne.s32.totalorder (!%p923_p7), %s921_s15, 0 }
  0x3a   : > { %148 = sbr.rel (%p923_p7) target bundleno = 820 (0x334), region = 28 }
  0x41   : > { %700 = dma.done.wait (%p924_p9), [#allocation6], 256  }
  0x42   : > { %702 = vsyncadd (%p924_p9), [#allocation6], 4294967040 }
  0x43   : > { %704 = dma.done.wait (%p924_p9), [#allocation9], 256  }
  0x44   : > { %706 = vsyncadd (%p924_p9), [#allocation9], 4294967040  ;;  %p166_p8 = scmp.eq.s32.totalorder %s713_s9, 0 }
  0x45   : > { %vm172_vm0 = vcmask (%p166_p8), 1024   ;;  %v725_v0 = vmov (%p166_p8), 0.0  }
  0x46   : > { %171 = sbr.rel (!%p166_p8) target bundleno = 77 (0x4d), region = 40  ;;  %173 = vst.msk [vmem:[#allocation2] sm:$0x3] (%p166_p8), %vm172_vm0, %v725_v0  ;;  %174 = vst.msk [vmem:[#allocation3] sm:$0x3] (%p166_p8), %vm172_vm0, %v725_v0 }
  0x4d PF: > { %p531_p6 = scmp.ne.s32.totalorder %s713_s9, 0 }
  0x4e   : > { %v178_v1 = vld [vmem:[#allocation5] sm:$0xff] (!%p531_p6)  ;;  %v191_v2 = vlaneseq (!%p531_p6)  ;;  %v180_v3 = vld [vmem:[#allocation8] sm:$0xff] (!%p531_p6)  ;;  %v726_v5 = vmov (!%p531_p6), 1983009808   ;;  %v179_v7 = vld [vmem:[#allocation5 + $0x8] sm:$0xff] (!%p531_p6)  ;;  %vm229_vm1 = vcmask (!%p531_p6), 1041408  }
  0x4f   : > { %177 = sbr.rel (%p531_p6) target bundleno = 253 (0xfd), region = 44  ;;  %v183_v4 = vmul.f32 (!%p531_p6), %v178_v1, %v178_v1  ;;  %v189_v6 = vunpack.c.l.s4 (!%p531_p6), %v726_v5  ;;  %v251_v9 = vmul.f32 (!%p531_p6), %v180_v3, %v180_v3  ;;  %v184_v13 = vmul.f32 (!%p531_p6), %v179_v7, %v179_v7  ;;  %v181_v15 = vld [vmem:[#allocation8 + $0x8] sm:$0xff] (!%p531_p6) }
  0x50   : > { %v192_v8 = vshrl.u32 (!%p531_p6), %v191_v2, 7  ;;  %v252_v18 = vmul.f32 (!%p531_p6), %v181_v15, %v181_v15  ;;  %v182_v1 = vld [vmem:[#allocation2] sm:$0x3] (!%p531_p6)  ;;  %vm248_vm2 = vcmask (!%p531_p6), 1024  }
  0x51   : > { %v187_v10 = vcombine.high (!%p531_p6), %v183_v4, %v183_v4  ;;  %v190_v11 = vunpack.c.0.s8 (!%p531_p6), %v189_v6  ;;  %v255_v12 = vcombine.high (!%p531_p6), %v251_v9, %v251_v9  ;;  %v204_v23 = vcombine.high (!%p531_p6), %v184_v13, %v184_v13 }
  0x52   : > { %v272_v28 = vcombine.high (!%p531_p6), %v252_v18, %v252_v18 }
  0x53   : > { %v193_v14 = vsub.s32 (!%p531_p6), %v190_v11, %v192_v8 }
  0x55   : > { %v194_v16 = vrot.slane (!%p531_p6), %v183_v4, %v193_v14  ;;  %v201_v17 = vrot.slane (!%p531_p6), %v187_v10, %v193_v14  ;;  %v262_v19 = vrot.slane (!%p531_p6), %v251_v9, %v193_v14  ;;  %v269_v20 = vrot.slane (!%p531_p6), %v255_v12, %v193_v14  ;;  %v250_v4 = vld [vmem:[#allocation3] sm:$0x3] (!%p531_p6) }
  0x56   : > { %v211_v24 = vrot.slane %v184_v13, %v193_v14  ;;  %v279_v32 = vrot.slane %v252_v18, %v193_v14  ;;  %v218_v33 = vrot.slane %v204_v23, %v193_v14  ;;  %v286_v43 = vrot.slane %v272_v28, %v193_v14 }
  0x57   : > { %v202_v21 = vcombine.high %v194_v16, %v194_v16  ;;  %v203_v22 = vcombine.high %v201_v17, %v201_v17  ;;  %v230_v25 = vsel %vm229_vm1, %v194_v16, 0.0  ;;  %v233_v27 = vsel %vm229_vm1, %v201_v17, 0.0 }
  0x58   : > { %v270_v30 = vcombine.high %v262_v19, %v262_v19  ;;  %v271_v31 = vcombine.high %v269_v20, %v269_v20  ;;  %v219_v34 = vcombine.high %v211_v24, %v211_v24  ;;  %v297_v36 = vsel %vm229_vm1, %v262_v19, 0.0 }
  0x59   : > { %v231_v26 = vsel %vm229_vm1, %v202_v21, 0.0  ;;  %v235_v35 = vsel %vm229_vm1, %v203_v22, 0.0  ;;  %v300_v39 = vsel %vm229_vm1, %v269_v20, 0.0  ;;  %v237_v40 = vsel %vm229_vm1, %v211_v24, 0.0 }
  0x5a   : > { %v232_v29 = vadd.f32 %v231_v26, %v230_v25  ;;  %v298_v38 = vsel %vm229_vm1, %v270_v30, 0.0  ;;  %v287_v44 = vcombine.high %v279_v32, %v279_v32  ;;  %v302_v45 = vsel %vm229_vm1, %v271_v31, 0.0 }
  0x5b   : > { %v299_v41 = vadd.f32 %v298_v38, %v297_v36  ;;  %v220_v46 = vcombine.high %v218_v33, %v218_v33  ;;  %v239_v47 = vsel %vm229_vm1, %v219_v34, 0.0  ;;  %v304_v50 = vsel %vm229_vm1, %v279_v32, 0.0 }
  0x5c   : > { %v234_v37 = vadd.f32 %v233_v27, %v232_v29  ;;  %v241_v51 = vsel %vm229_vm1, %v218_v33, 0.0  ;;  %v288_v54 = vcombine.high %v286_v43, %v286_v43  ;;  %v306_v55 = vsel %vm229_vm1, %v287_v44, 0.0 }
  0x5d   : > { %v301_v48 = vadd.f32 %v300_v39, %v299_v41  ;;  %v243_v56 = vsel %vm229_vm1, %v220_v46, 0.0  ;;  %v308_v59 = vsel %vm229_vm1, %v286_v43, 0.0 }
  0x5e   : > { %v236_v42 = vadd.f32 %v235_v35, %v234_v37  ;;  %v310_v62 = vsel %vm229_vm1, %v288_v54, 0.0 }
  0x5f   : > { %v303_v52 = vadd.f32 %v302_v45, %v301_v48 }
  0x60   : > { %v238_v49 = vadd.f32 %v237_v40, %v236_v42 }
  0x61   : > { %v305_v57 = vadd.f32 %v304_v50, %v303_v52 }
  0x62   : > { %v240_v53 = vadd.f32 %v239_v47, %v238_v49 }
  0x63   : > { %v307_v60 = vadd.f32 %v306_v55, %v305_v57 }
  0x64   : > { %v242_v58 = vadd.f32 %v241_v51, %v240_v53 }
  0x65   : > { %v309_v63 = vadd.f32 %v308_v59, %v307_v60 }
  0x66   : > { %v244_v61 = vadd.f32 %v243_v56, %v242_v58 }
  0x67   : > { %v311_v0 = vadd.f32 %v310_v62, %v309_v63 }
  0x68   : > { %245 = vadd.xlane.f32.xlu0 %v244_v61 }
  0x6c   : > { %312 = vadd.xlane.f32.xlu0 %v311_v0 }
  0xf5   : > { %v246_v2 = vpop.xlane.xlu0 %245 }
  0xf6   : > { %v247_v3 = vadd.f32 %v246_v2, %v182_v1 }
  0xf8   : > { %249 = vst.msk [vmem:[#allocation2] sm:$0x3] %vm248_vm2, %v247_v3 }
  0xf9   : > { %v313_v5 = vpop.xlane.xlu0 %312 }
  0xfa   : > { %v314_v6 = vadd.f32 %v313_v5, %v250_v4 }
  0xfc   : > { %315 = vst.msk [vmem:[#allocation3] sm:$0x3] %vm248_vm2, %v314_v6 }
  0xfd PF: > { %p316_p4 = scmp.eq.s32.totalorder %s713_s9, 1 }
  0xfe   : > { %vm323_vm3 = vcmask (%p316_p4), 1024   ;;  %v727_v9 = vmov (%p316_p4), 0.0  }
  0xff   : > { %320 = sbr.rel (!%p316_p4) target bundleno = 272 (0x110), region = 48  ;;  %v321_v7 = vld [vmem:[#allocation2] sm:$0x3] (%p316_p4)  ;;  %328 = vst.msk [vmem:[#allocation4] sm:$0x3] (%p316_p4), %vm323_vm3, %v727_v9 }
 0x100   : > { %600 = vrsqrt.f32 (%p316_p4), %v321_v7 }
 0x103   : > { %v325_v8 = vld [vmem:[#allocation3] sm:$0x3] (%p316_p4) }
 0x104   : > { %602 = vrsqrt.f32 (%p316_p4), %v325_v8 }
 0x10a   : > { %v601_v10 = vpop.eup %600 }
 0x10b   : > { %324 = vst.msk [vmem:[#allocation2] sm:$0x3] %vm323_vm3, %v601_v10 }
 0x10e   : > { %v603_v11 = vpop.eup %602 }
 0x10f   : > { %327 = vst.msk [vmem:[#allocation3] sm:$0x3] %vm323_vm3, %v603_v11 }
 0x110 PF: > { %p533_p3 = scmp.ne.s32.totalorder %s713_s9, 1 }
 0x111   : > { %v728_v13 = vmov (!%p533_p3), 0   ;;  %v729_v15 = vmov (!%p533_p3), 269488144   ;;  %v344_v17 = vlaneseq (!%p533_p3)  ;;  %v730_v22 = vmov (!%p533_p3), 1983009808   ;;  %v332_v24 = vld [vmem:[#allocation5] sm:$0xff] (!%p533_p3) }
 0x112   : > { %331 = sbr.rel (%p533_p3) target bundleno = 579 (0x243), region = 52  ;;  %v336_v12 = vld [vmem:[#allocation2] sm:$0x3] (!%p533_p3)  ;;  %604 = vset.pattern.permute.xlu0 (!%p533_p3), %v728_v13  ;;  %v342_v16 = vunpack.c.l.s4 (!%p533_p3), %v729_v15  ;;  %v375_v23 = vunpack.c.l.s4 (!%p533_p3), %v730_v22  ;;  %v333_v26 = vld [vmem:[#allocation5 + $0x8] sm:$0xff] (!%p533_p3)  ;;  %v334_v28 = vld [vmem:[#allocation8] sm:$0xff] (!%p533_p3)  ;;  %vm415_vm4 = vcmask (!%p533_p3), 1041408  }
 0x113   : > { %339 = vperm.xlu0 (!%p533_p3), %604, %v336_v12   ;;  %v345_v19 = vshrl.u32 (!%p533_p3), %v344_v17, 7  ;;  %v335_v29 = vld [vmem:[#allocation8 + $0x8] sm:$0xff] (!%p533_p3)  ;;  %vm434_vm5 = vcmask (!%p533_p3), 1024  }
 0x114   : > { %v343_v18 = vunpack.c.0.s8 (!%p533_p3), %v342_v16  ;;  %v376_v30 = vunpack.c.0.s8 (!%p533_p3), %v375_v23  ;;  %v368_v2 = vld [vmem:[#allocation4] sm:$0x3] (!%p533_p3) }
 0x116   : > { %v351_v14 = vld [vmem:[#allocation3] sm:$0x3] (!%p533_p3)  ;;  %v346_v20 = vsub.s32 (!%p533_p3), %v343_v18, %v345_v19  ;;  %v379_v36 = vsub.s32 (!%p533_p3), %v376_v30, %v345_v19 }
 0x117   : > { %354 = vperm.xlu0 (!%p533_p3), %604, %v351_v14  }
 0x192   : > { %v340_v21 = vpop.permute.xlu0 %339 }
 0x193   : > { %v347_v25 = vrot.slane %v340_v21, %v346_v20 }
 0x195   : > { %v349_v32 = vmul.f32 %v347_v25, %v332_v24  ;;  %v350_v33 = vmul.f32 %v347_v25, %v333_v26 }
 0x196   : > { %v355_v27 = vpop.permute.xlu0 %354 }
 0x197   : > { %v362_v31 = vrot.slane %v355_v27, %v346_v20 }
 0x199   : > { %v364_v34 = vmul.f32 %v362_v31, %v334_v28  ;;  %v365_v35 = vmul.f32 %v362_v31, %v335_v29 }
 0x19b   : > { %v366_v37 = vsub.f32 %v349_v32, %v364_v34  ;;  %v367_v38 = vsub.f32 %v350_v33, %v365_v35 }
 0x19d   : > { %v369_v39 = vand.u32 2147483647, %v366_v37  ;;  %v370_v40 = vand.u32 2147483647, %v367_v38 }
 0x19f   : > { %v373_v41 = vcombine.high %v369_v39, %v369_v39  ;;  %v380_v42 = vrot.slane %v369_v39, %v379_v36  ;;  %v397_v45 = vrot.slane %v370_v40, %v379_v36  ;;  %v390_v49 = vcombine.high %v370_v40, %v370_v40 }
 0x1a1   : > { %v387_v43 = vrot.slane %v373_v41, %v379_v36  ;;  %v388_v44 = vcombine.high %v380_v42, %v380_v42  ;;  %v416_v46 = vsel %vm415_vm4, %v380_v42, 0.0  ;;  %v404_v53 = vrot.slane %v390_v49, %v379_v36 }
 0x1a2   : > { %v405_v54 = vcombine.high %v397_v45, %v397_v45  ;;  %v423_v57 = vsel %vm415_vm4, %v397_v45, 0.0 }
 0x1a3   : > { %v417_v47 = vsel %vm415_vm4, %v388_v44, 0.0  ;;  %v389_v48 = vcombine.high %v387_v43, %v387_v43  ;;  %v419_v51 = vsel %vm415_vm4, %v387_v43, 0.0  ;;  %v406_v59 = vcombine.high %v404_v53, %v404_v53 }
 0x1a4   : > { %v418_v50 = vadd.f32 %v417_v47, %v416_v46  ;;  %v425_v60 = vsel %vm415_vm4, %v405_v54, 0.0  ;;  %v427_v62 = vsel %vm415_vm4, %v404_v53, 0.0 }
 0x1a5   : > { %v421_v55 = vsel %vm415_vm4, %v389_v48, 0.0  ;;  %v429_v0 = vsel %vm415_vm4, %v406_v59, 0.0 }
 0x1a6   : > { %v420_v52 = vadd.f32 %v419_v51, %v418_v50 }
 0x1a8   : > { %v422_v56 = vadd.f32 %v421_v55, %v420_v52 }
 0x1aa   : > { %v424_v58 = vadd.f32 %v423_v57, %v422_v56 }
 0x1ac   : > { %v426_v61 = vadd.f32 %v425_v60, %v424_v58 }
 0x1ae   : > { %v428_v63 = vadd.f32 %v427_v62, %v426_v61 }
 0x1b0   : > { %v430_v1 = vadd.f32 %v429_v0, %v428_v63 }
 0x1b2   : > { %431 = vadd.xlane.f32.xlu1 %v430_v1 }
 0x23f   : > { %v432_v3 = vpop.xlane.xlu1 %431 }
 0x240   : > { %v433_v4 = vadd.f32 %v432_v3, %v368_v2 }
 0x242   : > { %435 = vst.msk [vmem:[#allocation4] sm:$0x3] %vm434_vm5, %v433_v4 }
 0x243 PF: > { %437 = sbr.rel (!%p316_p4) target bundleno = 795 (0x31b), region = 56  ;;  %vm439_vm6 = vcmask (%p316_p4), 1024   ;;  %vm452_vm7 = vcmask (%p316_p4), 0  }
 0x249   : > { %v438_v5 = vld [vmem:[#allocation4] sm:$0x3] (%p316_p4) }
 0x24a   : > { %v440_v6 = vsel %vm439_vm6, %v438_v5, 0.0 }
 0x24b   : > { %441 = vadd.xlane.f32.xlu0 %v440_v6 }
 0x2d8   : > { %v442_v7 = vpop.xlane.xlu0 %441 }
 0x2d9   : > { %v443_v8 = vrot.slane %v442_v7, 4 }
 0x2db   : > { %v444_v9 = vadd.f32 %v443_v8, %v442_v7 }
 0x2dd   : > { %v445_v10 = vrot.slane %v444_v9, 2 }
 0x2df   : > { %v446_v11 = vadd.f32 %v445_v10, %v444_v9 }
 0x2e1   : > { %v447_v12 = vrot.slane %v446_v11, 1 }
 0x2e3   : > { %v448_v13 = vadd.f32 %v447_v12, %v446_v11 }
 0x2e5   : > { %540 = vpush %v448_v13 }
 0x316   : > { %s541_s14 = spop %540 }
 0x317   : > { %s450_s15 = smul.f32 0.00048828125, %s541_s14 }
 0x319   : > { %v451_v14 = vstv %s450_s15 }
 0x31a   : > { %453 = vst.msk [vmem:[#allocation10] sm:$0x1] %vm452_vm7, %v451_v14 }
 0x31b PF: > { %p879_p10 = scmp.eq.s32.totalorder %s523_s12, 1  ;;  %s731_s19 = smov [#allocation10]  }
 0x31c   : > { %s461_s20 = sshll.u32 %s731_s19, 4  ;;  %s462_s20 = int_to_ptr.vmem [resolvable:$true] %s461_s20 }
 0x31d   : > { %s661_s22 = scalar_lea.vmem %s462_s20, 16  ;;  %s667_s23 = scalar_lea.vmem %s462_s20, 32 }
 0x31e   : > { %p662_p11 = scmp.ne.s32.totalorder %s462_s20, %s661_s22  ;;  %p668_p0 = scmp.lt.s32.totalorder %s462_s20, %s462_s20 }
 0x31f   : > { %p669_p1 = scmp.lt.s32.totalorder %s667_s23, %s661_s22 }
 0x320   : > { %p663_p12 = pnand %p662_p11, %p879_p10 }
 0x321   : > { %p670_p2 = por %p669_p1, %p668_p0 }
 0x322   : > { %p664_p13 = pneg %p663_p12 }
 0x324   : > { %p671_p5 = pnand %p670_p2, %p664_p13 }
 0x326   : > { %674 = shalt.err (!%p671_p5)
}
 0x327   : > { %s675_s25 = scalar_lea.hbm %s916_s2, 16 }
 0x328   : > { %p676_p7 = scmp.ne.s32.totalorder %s916_s2, %s675_s25  ;;  %p681_p6 = scmp.lt.u32.totalorder %s675_s25, %s916_s2 }
 0x32a   : > { %p677_p9 = pnand %p676_p7, %p879_p10 }
 0x32c   : > { %p678_p8 = pneg %p677_p9 }
 0x32e   : > { %p683_p4 = pnand %p681_p6, %p678_p8 }
 0x330   : > { %686 = shalt.err (!%p683_p4)
}
 0x331   : > { %551 = dma.vmem_to_hbm [thread:$0]  (%p879_p10), %s462_s20, 16, %s916_s2, [#allocation7]  }
 0x332   : > { %708 = dma.done.wait (%p879_p10), [#allocation7], 16  }
 0x333   : > { %710 = vsyncadd (%p879_p10), [#allocation7], 4294967280 }
 0x334 PF: > { %s15_s11 = sadd.s32 1, %s721_s11   ;;  %s926_s9 = smov %s717_s10 }
 0x335   : > { %p12_p3 = scmp.ge.s32.totalorder %s15_s11, 4   ;;  %s927_s10 = smov %s929_s13 }
 0x337   :  { %14 = sbr.rel (!%p12_p3) target bundleno = 4 (0x4), region = 83 }
 0x33e   :  { %474 = vsyncpa [#allocation6], 1 }
 0x33f   :  { %476 = vsyncpa [#allocation6 + $0x1], 1 }
 0x340   :  { %477 = vsyncpa [#allocation9], 1 }
 0x341   :  { %478 = vsyncpa [#allocation7], 1 }
 0x342   :  { %480 = vsyncpa [#allocation7 + $0x1], 1 }

</bundles_post_ra>
